<compile_context>
chip_gen: v7x
topology: tpu7x:2x2x1
jax: 0.10.0
libtpu: 0.0.40
codegen_flags: <defaults>
</compile_context>

<pallas_src>
import functools

import jax
import jax.numpy as jnp
from jax.experimental import pallas as pl
from jax.experimental.pallas import tpu as pltpu


def _pack_dia_conv_kernel(x_ref, w_ref, b_ref, o_ref, *, kernel_sizes, use_bf16):
    """Fused PackDiaConv1D forward for one batch tile.

    x_ref: (Bt, L0, D)        input activation tile (channels-last)
    w_ref: (sum_i K_i*D, D)   packed per-tap weights; row j*D + i of layer block == torch_w[o, i, j]
    b_ref: (n_layers, D)      biases
    o_ref: (Bt, L_final, D)   output tile
    """
    bt = x_ref.shape[0]
    d = x_ref.shape[2]
    mx_dtype = jnp.bfloat16 if use_bf16 else jnp.float32

    # Per-batch 2D activations kept as VMEM-resident traced values across the whole chain.
    acts = [x_ref[b].astype(jnp.float32) for b in range(bt)]

    row = 0
    for li, k in enumerate(kernel_sizes):
        l_in = acts[0].shape[0]
        l_out = l_in + 2 - (k - 1)

        # Layer weights / bias: loaded once per layer (weights are already resident in VMEM),
        # reused for every batch element in the tile.
        w_taps = [w_ref[row + j * d: row + (j + 1) * d, :].astype(mx_dtype) for j in range(k)]
        row += k * d
        bias = b_ref[li:li + 1, :].astype(jnp.float32)          # (1, D)

        new_acts = []
        for b in range(bt):
            a = acts[b]
            # circular pad of 1 on each side along L (sublane concat of two single rows)
            a_pad = jnp.concatenate([a[-1:, :], a, a[:1, :]], axis=0)          # (L_in + 2, D)

            # per-tap MXU matmuls accumulated in f32 (same MXU work as folded im2col, no cols copy)
            y = jnp.dot(a_pad[0:l_out, :].astype(mx_dtype), w_taps[0],
                        preferred_element_type=jnp.float32)
            for j in range(1, k):
                y = y + jnp.dot(a_pad[j:j + l_out, :].astype(mx_dtype), w_taps[j],
                                preferred_element_type=jnp.float32)

            # fused epilogue: bias + ReLU.  Dropout(0.2) == identity in eval mode.
            new_acts.append(jnp.maximum(y + bias, 0.0))                        # (L_out, D)
        acts = new_acts

    # Single write of the final activation per batch element.
    for b in range(bt):
        o_ref[b] = acts[b].astype(o_ref.dtype)


def pack_params(params):
    """One-time packing of torch-layout Conv1d params into the fused-kernel layout.

    params: list of (w, b) with w: (D_out, D_in, K) torch layout, b: (D_out,)
    returns (w_packed (sum_i K_i*D_in, D_out), b_packed (n_layers, D_out), kernel_sizes)
    """
    kernel_sizes = tuple(int(w.shape[-1]) for w, _ in params)
    d_model = params[0][0].shape[0]
    w_rows, b_rows = [], []
    for (w, b) in params:
        k = w.shape[-1]
        # (D_out, D_in, K) -> (K, D_in, D_out) -> (K*D_in, D_out); row j*D+i == w[o, i, j]
        w_rows.append(jnp.transpose(w, (2, 1, 0)).reshape(k * d_model, d_model))
        b_rows.append(b.reshape(1, d_model))
    return jnp.concatenate(w_rows, axis=0), jnp.concatenate(b_rows, axis=0), kernel_sizes


def pack_dia_conv1d(x, packed, *, batch_tile=1, use_bf16=False):
    """Fused PackDiaConv1D forward. x: (B, L, D); packed: output of pack_params."""
    w_packed, b_packed, kernel_sizes = packed
    B, L, D = x.shape
    n_layers = len(kernel_sizes)
    r_total = w_packed.shape[0]

    # static per-layer output lengths -> final output length
    l_out = L
    for k in kernel_sizes:
        l_out = l_out + 2 - (k - 1)

    if batch_tile is None:
        batch_tile = B
    batch_tile = min(batch_tile, B)
    assert B % batch_tile == 0, (B, batch_tile)

    kernel = functools.partial(_pack_dia_conv_kernel,
                               kernel_sizes=kernel_sizes, use_bf16=use_bf16)

    return pl.pallas_call(
        kernel,
        out_shape=jax.ShapeDtypeStruct((B, l_out, D), x.dtype),
        grid_spec=pltpu.PrefetchScalarGridSpec(
            num_scalar_prefetch=0,
            grid=(B // batch_tile,),
            in_specs=[
                pl.BlockSpec((batch_tile, L, D), lambda bi: (bi, 0, 0)),
                # constant index_map -> weights / biases DMA'd once, stay resident across steps
                pl.BlockSpec((r_total, D), lambda bi: (0, 0)),
                pl.BlockSpec((n_layers, D), lambda bi: (0, 0)),
            ],
            out_specs=pl.BlockSpec((batch_tile, l_out, D), lambda bi: (bi, 0, 0)),
        ),
        compiler_params=pltpu.CompilerParams(dimension_semantics=("parallel",)),
    )(x, w_packed, b_packed)


def init_params(key, dilations, d_model):
    """Deterministic PyTorch-style Conv1d init: U(-1/sqrt(fan_in), 1/sqrt(fan_in))."""
    params = []
    for k_size in dilations:
        key, kw, kb = jax.random.split(key, 3)
        bound = 1.0 / float(d_model * k_size) ** 0.5
        w = jax.random.uniform(kw, (d_model, d_model, k_size), jnp.float32, -bound, bound)
        b = jax.random.uniform(kb, (d_model,), jnp.float32, -bound, bound)
        params.append((w, b))
    return params


def _ref_layer(x, w, b):
    """Pure-JAX reference for one layer (circular pad + VALID conv + bias + ReLU)."""
    x_pad = jnp.concatenate([x[:, -1:, :], x, x[:, :1, :]], axis=1)
    y = jax.lax.conv_general_dilated(
        x_pad,
        jnp.transpose(w, (2, 1, 0)),  # (K, I, O)
        window_strides=(1,),
        padding="VALID",
        dimension_numbers=("NHC", "HIO", "NHC"),
    )
    return jnp.maximum(y + b[None, None, :], 0.0)


if __name__ == "__main__":
    # Small shapes consistent with the forward: x = (batch, seq_len, d_model)
    B, L, D = 2, 16, 32
    dilations = [3, 2]  # note: the module uses the "dilation" entries as kernel sizes

    key = jax.random.PRNGKey(0)
    key, kx = jax.random.split(key)
    x = jax.random.normal(kx, (B, L, D), jnp.float32)
    params = init_params(key, dilations, D)
    packed = pack_params(params)  # one-time weight packing (no per-call XLA transposes)

    out = jax.block_until_ready(pack_dia_conv1d(x, packed))

    # pure-JAX reference
    ref = x
    for (w, b) in params:
        ref = _ref_layer(ref, w, b)
    assert out.shape == ref.shape, (out.shape, ref.shape)
    assert jnp.allclose(out, ref, rtol=1e-4, atol=1e-4), float(jnp.max(jnp.abs(out - ref)))

    # whole-batch tile variant (one grid step) must match too
    out_tile = jax.block_until_ready(pack_dia_conv1d(x, packed, batch_tile=B))
    assert jnp.allclose(out_tile, ref, rtol=1e-4, atol=1e-4), float(jnp.max(jnp.abs(out_tile - ref)))

    # bf16-operand MXU path (v6e/v7x throughput option); f32 accumulation, looser tolerance.
    out_bf16 = jax.block_until_ready(pack_dia_conv1d(x, packed, use_bf16=True))
    assert jnp.allclose(out_bf16, ref, rtol=5e-2, atol=5e-2), float(jnp.max(jnp.abs(out_bf16 - ref)))

    print("KERNEL_OK")
</pallas_src>

<mosaic_0001>
module attributes {stable_mosaic.version = 11 : i64} {
  func.func @_pack_dia_conv_kernel(%arg0: i32, %arg1: memref<1x16x32xf32, #tpu.memory_space<vmem>>, %arg2: memref<160x32xf32, #tpu.memory_space<vmem>>, %arg3: memref<2x32xf32, #tpu.memory_space<vmem>>, %arg4: memref<1x17x32xf32, #tpu.memory_space<vmem>>) attributes {dimension_semantics = [#tpu.dimension_semantics<parallel>], iteration_bounds = array<i64: 2>, scalar_prefetch = 0 : i64, scratch_operands = 0 : i64, tpu.core_type = #tpu.core_type<tc>, window_params = [{transform_indices = @transform_0, window_bounds = array<i64: 1, 16, 32>}, {pipeline_mode = #tpu.pipeline_mode<synchronous>, transform_indices = @transform_1, window_bounds = array<i64: 160, 32>}, {pipeline_mode = #tpu.pipeline_mode<synchronous>, transform_indices = @transform_2, window_bounds = array<i64: 2, 32>}, {transform_indices = @transform_3, window_bounds = array<i64: 1, 17, 32>}]} {
    %c0 = arith.constant 0 : index
    %c0_0 = arith.constant 0 : index
    %c0_1 = arith.constant 0 : index
    %0 = vector.load %arg1[%c0, %c0_0, %c0_1] : memref<1x16x32xf32, #tpu.memory_space<vmem>>, vector<1x16x32xf32>
    %1 = vector.shape_cast %0 : vector<1x16x32xf32> to vector<16x32xf32>
    %c0_2 = arith.constant 0 : index
    %c0_3 = arith.constant 0 : index
    %2 = vector.load %arg2[%c0_2, %c0_3] : memref<160x32xf32, #tpu.memory_space<vmem>>, vector<32x32xf32>
    %c32 = arith.constant 32 : index
    %c0_4 = arith.constant 0 : index
    %3 = vector.load %arg2[%c32, %c0_4] : memref<160x32xf32, #tpu.memory_space<vmem>>, vector<32x32xf32>
    %c64 = arith.constant 64 : index
    %c0_5 = arith.constant 0 : index
    %4 = vector.load %arg2[%c64, %c0_5] : memref<160x32xf32, #tpu.memory_space<vmem>>, vector<32x32xf32>
    %c0_6 = arith.constant 0 : index
    %c0_7 = arith.constant 0 : index
    %5 = vector.load %arg3[%c0_6, %c0_7] : memref<2x32xf32, #tpu.memory_space<vmem>>, vector<1x32xf32>
    %6 = vector.extract_strided_slice %1 {offsets = [15, 0], sizes = [1, 32], strides = [1, 1]} : vector<16x32xf32> to vector<1x32xf32>
    %7 = vector.extract_strided_slice %1 {offsets = [0, 0], sizes = [1, 32], strides = [1, 1]} : vector<16x32xf32> to vector<1x32xf32>
    %8 = tpu.concatenate %6, %1, %7 in 0 : vector<1x32xf32>, vector<16x32xf32>, vector<1x32xf32> -> vector<18x32xf32>
    %9 = vector.extract_strided_slice %8 {offsets = [0, 0], sizes = [16, 32], strides = [1, 1]} : vector<18x32xf32> to vector<16x32xf32>
    %cst = arith.constant dense<0.000000e+00> : vector<16x32xf32>
    %10 = tpu.matmul %9, %2, %cst {dimension_numbers = #tpu.dot_dimension_numbers<[1], [0], [0], [1], [0, 0, 1, 1], [], []>} : vector<16x32xf32>, vector<32x32xf32>, vector<16x32xf32> -> vector<16x32xf32>
    %11 = vector.extract_strided_slice %8 {offsets = [1, 0], sizes = [16, 32], strides = [1, 1]} : vector<18x32xf32> to vector<16x32xf32>
    %cst_8 = arith.constant dense<0.000000e+00> : vector<16x32xf32>
    %12 = tpu.matmul %11, %3, %cst_8 {dimension_numbers = #tpu.dot_dimension_numbers<[1], [0], [0], [1], [0, 0, 1, 1], [], []>} : vector<16x32xf32>, vector<32x32xf32>, vector<16x32xf32> -> vector<16x32xf32>
    %13 = arith.addf %10, %12 : vector<16x32xf32>
    %14 = vector.extract_strided_slice %8 {offsets = [2, 0], sizes = [16, 32], strides = [1, 1]} : vector<18x32xf32> to vector<16x32xf32>
    %cst_9 = arith.constant dense<0.000000e+00> : vector<16x32xf32>
    %15 = tpu.matmul %14, %4, %cst_9 {dimension_numbers = #tpu.dot_dimension_numbers<[1], [0], [0], [1], [0, 0, 1, 1], [], []>} : vector<16x32xf32>, vector<32x32xf32>, vector<16x32xf32> -> vector<16x32xf32>
    %16 = arith.addf %13, %15 : vector<16x32xf32>
    %17 = vector.broadcast %5 : vector<1x32xf32> to vector<16x32xf32>
    %18 = arith.addf %16, %17 : vector<16x32xf32>
    %cst_10 = arith.constant 0.000000e+00 : f32
    %19 = vector.broadcast %cst_10 : f32 to vector<16x32xf32>
    %20 = arith.maximumf %18, %19 : vector<16x32xf32>
    %c96 = arith.constant 96 : index
    %c0_11 = arith.constant 0 : index
    %21 = vector.load %arg2[%c96, %c0_11] : memref<160x32xf32, #tpu.memory_space<vmem>>, vector<32x32xf32>
    %c128 = arith.constant 128 : index
    %c0_12 = arith.constant 0 : index
    %22 = vector.load %arg2[%c128, %c0_12] : memref<160x32xf32, #tpu.memory_space<vmem>>, vector<32x32xf32>
    %c1 = arith.constant 1 : index
    %c0_13 = arith.constant 0 : index
    %23 = vector.load %arg3[%c1, %c0_13] : memref<2x32xf32, #tpu.memory_space<vmem>>, vector<1x32xf32>
    %24 = vector.extract_strided_slice %20 {offsets = [15, 0], sizes = [1, 32], strides = [1, 1]} : vector<16x32xf32> to vector<1x32xf32>
    %25 = vector.extract_strided_slice %20 {offsets = [0, 0], sizes = [1, 32], strides = [1, 1]} : vector<16x32xf32> to vector<1x32xf32>
    %26 = tpu.concatenate %24, %20, %25 in 0 : vector<1x32xf32>, vector<16x32xf32>, vector<1x32xf32> -> vector<18x32xf32>
    %27 = vector.extract_strided_slice %26 {offsets = [0, 0], sizes = [17, 32], strides = [1, 1]} : vector<18x32xf32> to vector<17x32xf32>
    %cst_14 = arith.constant dense<0.000000e+00> : vector<17x32xf32>
    %28 = tpu.matmul %27, %21, %cst_14 {dimension_numbers = #tpu.dot_dimension_numbers<[1], [0], [0], [1], [0, 0, 1, 1], [], []>} : vector<17x32xf32>, vector<32x32xf32>, vector<17x32xf32> -> vector<17x32xf32>
    %29 = vector.extract_strided_slice %26 {offsets = [1, 0], sizes = [17, 32], strides = [1, 1]} : vector<18x32xf32> to vector<17x32xf32>
    %cst_15 = arith.constant dense<0.000000e+00> : vector<17x32xf32>
    %30 = tpu.matmul %29, %22, %cst_15 {dimension_numbers = #tpu.dot_dimension_numbers<[1], [0], [0], [1], [0, 0, 1, 1], [], []>} : vector<17x32xf32>, vector<32x32xf32>, vector<17x32xf32> -> vector<17x32xf32>
    %31 = arith.addf %28, %30 : vector<17x32xf32>
    %32 = vector.broadcast %23 : vector<1x32xf32> to vector<17x32xf32>
    %33 = arith.addf %31, %32 : vector<17x32xf32>
    %cst_16 = arith.constant 0.000000e+00 : f32
    %34 = vector.broadcast %cst_16 : f32 to vector<17x32xf32>
    %35 = arith.maximumf %33, %34 : vector<17x32xf32>
    %c0_17 = arith.constant 0 : index
    %c0_18 = arith.constant 0 : index
    %c0_19 = arith.constant 0 : index
    %36 = vector.load %arg4[%c0_17, %c0_18, %c0_19] : memref<1x17x32xf32, #tpu.memory_space<vmem>>, vector<1x17x32xf32>
    %37 = vector.shape_cast %36 : vector<1x17x32xf32> to vector<17x32xf32>
    %38 = vector.shape_cast %35 : vector<17x32xf32> to vector<1x17x32xf32>
    tpu.vector_store %arg4[%c0_17, %c0_18, %c0_19], %38 {strides = array<i32>} : memref<1x17x32xf32, #tpu.memory_space<vmem>>, vector<1x17x32xf32>,
    return
  }
  func.func @transform_0(%arg0: i32) -> (i32, i32, i32) {
    %c0_i32 = arith.constant 0 : i32
    %c0_i32_0 = arith.constant 0 : i32
    %c0_i32_1 = arith.constant 0 : i32
    return %arg0, %c0_i32, %c0_i32_0 : i32, i32, i32
  }
  func.func @transform_1(%arg0: i32) -> (i32, i32) {
    %c0_i32 = arith.constant 0 : i32
    %c0_i32_0 = arith.constant 0 : i32
    %c0_i32_1 = arith.constant 0 : i32
    return %c0_i32, %c0_i32_0 : i32, i32
  }
  func.func @transform_2(%arg0: i32) -> (i32, i32) {
    %c0_i32 = arith.constant 0 : i32
    %c0_i32_0 = arith.constant 0 : i32
    %c0_i32_1 = arith.constant 0 : i32
    return %c0_i32, %c0_i32_0 : i32, i32
  }
  func.func @transform_3(%arg0: i32) -> (i32, i32, i32) {
    %c0_i32 = arith.constant 0 : i32
    %c0_i32_0 = arith.constant 0 : i32
    %c0_i32_1 = arith.constant 0 : i32
    return %arg0, %c0_i32, %c0_i32_0 : i32, i32, i32
  }
}

</mosaic_0001>

<bundles_post_ra>
// kernel: tpu_custom_call.1
= control target key start
LH: loop header
LB: loop body
LE: loop exit
PB: predicated region body
PF: predicated region fallthrough
CT: control target
= control target key end

     0   :  { %s922_s12 = smov 0   ;;  %s1037_s0 = inlined_call_operand.vmem [shape: f32[2,16,32], index: 0, kind: input, shape index: {}]   ;;  %s1038_s1 = inlined_call_operand.vmem [shape: f32[160,32], index: 1, kind: input, shape index: {}]   ;;  %s1039_s2 = inlined_call_operand.vmem [shape: f32[2,32], index: 2, kind: input, shape index: {}]   ;;  %s1040_s3 = inlined_call_operand.vmem [shape: f32[2,17,32], index: 3, kind: output, shape index: {}]  }
   0x1 LB: > { %s715_s13 = sadd.s32 4294967295, %s897_s12   ;;  %p719_p0 = scmp.ge.s32.totalorder %s897_s12, 1  ;;  %s897_s12 = sphi %s922_s12, %s13_s12  }
   0x2   : > { %p137_p1 = scmp.lt.s32.totalorder %s897_s12, 3 }
   0x4   : > { %p138_p2 = pnand %p719_p0, %p137_p1 }
   0x5   : > { %v177_v0 = vld [vmem:[%s1038_s1 + $0x20] sm:$0xff] (!%p138_p2)  ;;  %v178_v1 = vld [vmem:[%s1038_s1 + $0x28] sm:$0xff] (!%p138_p2)  ;;  %v179_v2 = vld [vmem:[%s1038_s1 + $0x30] sm:$0xff] (!%p138_p2)  ;;  %p161_p3 = scmp.lt.s32.totalorder (!%p138_p2), %s715_s13, 1  ;;  %vm190_vm0 = vcmask (!%p138_p2), 1040384   ;;  %vm196_vm1 = vcmask (!%p138_p2), 1046528  }
   0x6   : > { %141 = sbr.rel (%p138_p2) target bundleno = 502 (0x1f6), region = 32  ;;  %v839_v3 = vpack.c.bf16 (!%p138_p2), %v178_v1, %v177_v0  ;;  %v180_v4 = vld [vmem:[%s1038_s1 + $0x38] sm:$0xff] (!%p138_p2)  ;;  %v173_v6 = vld [vmem:[%s1038_s1] sm:$0xff] (!%p138_p2)  ;;  %v174_v7 = vld [vmem:[%s1038_s1 + $0x8] sm:$0xff] (!%p138_p2)  ;;  %vm201_vm2 = vcmask (!%p138_p2), 261120   ;;  %vm360_vm3 = vcmask (!%p138_p2), 1045504  }
   0x7   : > { %v843_v5 = vpack.c.bf16 (!%p138_p2), %v180_v4, %v179_v2  ;;  %v847_v8 = vpack.c.bf16 (!%p138_p2), %v174_v7, %v173_v6  ;;  %v175_v15 = vld [vmem:[%s1038_s1 + $0x10] sm:$0xff] (!%p138_p2)  ;;  %v176_v16 = vld [vmem:[%s1038_s1 + $0x18] sm:$0xff] (!%p138_p2)  ;;  %v181_v22 = vld [vmem:[%s1038_s1 + $0x40] sm:$0xff] (!%p138_p2)  ;;  %v899_v35 = vmov (!%p138_p2), 0.0|0.0   ;;  %vm900_vm4 = vmmov (!%p138_p2), 0  }
   0x8   : > { %840 = vmatprep.subr.bf16.mxu0 (!%p138_p2), %v839_v3  ;;  %v851_v21 = vpack.c.bf16 (!%p138_p2), %v176_v16, %v175_v15  ;;  %v182_v23 = vld [vmem:[%s1038_s1 + $0x48] sm:$0xff] (!%p138_p2)  ;;  %v183_v27 = vld [vmem:[%s1038_s1 + $0x50] sm:$0xff] (!%p138_p2)  ;;  %v184_v28 = vld [vmem:[%s1038_s1 + $0x58] sm:$0xff] (!%p138_p2)  ;;  %863 = vmatprep.subr.bf16.mxu1 (!%p138_p2), %v899_v35  ;;  %v901_v39 = vmov (!%p138_p2), 0.0   ;;  %vm658_vm5 = vcmask (!%p138_p2), 253952  }
   0x9   : > { %842 = vmatpush3.bf16.msra.mxu0 (!%p138_p2), %v839_v3  ;;  %v855_v24 = vpack.c.bf16 (!%p138_p2), %v182_v23, %v181_v22  ;;  %v859_v29 = vpack.c.bf16 (!%p138_p2), %v184_v28, %v183_v27  ;;  %v458_v32 = vld [vmem:[%s1038_s1 + $0x80] sm:$0xff] (!%p138_p2)  ;;  %v459_v33 = vld [vmem:[%s1038_s1 + $0x88] sm:$0xff] (!%p138_p2)  ;;  %v460_v36 = vld [vmem:[%s1038_s1 + $0x90] sm:$0xff] (!%p138_p2)  ;;  %813 = vmatprep.mubr.msk.f32.mxu1 (!%p138_p2), %vm900_vm4, %v901_v39 }
   0xa   : > { %844 = vmatprep.subr.bf16.mxu0 (!%p138_p2), %v843_v5  ;;  %v864_v34 = vpack.c.bf16 (!%p138_p2), %v459_v33, %v458_v32  ;;  %v461_v37 = vld [vmem:[%s1038_s1 + $0x98] sm:$0xff] (!%p138_p2)  ;;  %v729_v40 = vld [vmem:[%s1039_s2] ss:$0 sm:$0xff] (!%p138_p2)  ;;  %v455_v50 = vld [vmem:[%s1038_s1 + $0x68] sm:$0xff] (!%p138_p2) }
   0xb   : > { %v867_v38 = vpack.c.bf16 (!%p138_p2), %v461_v37, %v460_v36  ;;  %v454_v49 = vld [vmem:[%s1038_s1 + $0x60] sm:$0xff] (!%p138_p2)  ;;  %v456_v56 = vld [vmem:[%s1038_s1 + $0x70] sm:$0xff] (!%p138_p2)  ;;  %v457_v57 = vld [vmem:[%s1038_s1 + $0x78] sm:$0xff] (!%p138_p2) }
   0xc   : > { %865 = vmatpush3.bf16.msra.mxu1 (!%p138_p2), %v864_v34  ;;  %v870_v55 = vpack.c.bf16 (!%p138_p2), %v455_v50, %v454_v49  ;;  %v873_v60 = vpack.c.bf16 (!%p138_p2), %v457_v57, %v456_v56  ;;  %v736_v3 = vld [vmem:[%s1039_s2 + $0x1] ss:$0 sm:$0xff] (!%p138_p2) }
   0xd   : > { %s1042_s13 = smov (!%p161_p3, %s715_s13), 1  ;;  %846 = vmatpush3.bf16.msra.mxu0 %v843_v5  ;;  %866 = vmatprep.subr.bf16.mxu1 %v899_v35 }
   0xe   : > { %s739_s26 = sshll.u32 %s1042_s13, 4  ;;  %848 = vmatprep.subr.bf16.mxu0 %v847_v8  ;;  %s879_s8 = smul.u32 24, %s1042_s13 }
   0xf   : > { %s165_s29 = scalar_lea.vmem %s1037_s0, %s739_s26 }
  0x10   : > { %v171_v9 = vld [vmem:[%s165_s29] sm:$0xff]  ;;  %v172_v10 = vld [vmem:[%s165_s29 + $0x8] sm:$0xff]  ;;  %868 = vmatpush3.bf16.msra.mxu1 %v867_v38  ;;  %s170_s15 = scalar_lea.vmem %s1040_s3, %s879_s8 }
  0x11   : > { %v187_v11 = vrot.slane %v172_v10, 7  ;;  %v191_v12 = vrot.slane %v171_v9, 7  ;;  %869 = vmatprep.subr.bf16.mxu1 %v899_v35 }
  0x13   : > { %v192_v13 = vsel %vm190_vm0, %v191_v12, %v187_v11  ;;  %v194_v14 = vsel %vm190_vm0, %v187_v11, %v191_v12 }
  0x14   : > { %v197_v17 = vrot.slane %v194_v14, 1  ;;  %v198_v18 = vrot.slane %v192_v13, 1  ;;  %v361_v25 = vrot.slane %v194_v14, 2  ;;  %v362_v26 = vrot.slane %v192_v13, 2 }
  0x16   : > { %v199_v19 = vsel %vm196_vm1, %v197_v17, %v198_v18  ;;  %v200_v20 = vsel %vm196_vm1, %v198_v18, %v197_v17  ;;  %v363_v30 = vsel %vm360_vm3, %v361_v25, %v362_v26  ;;  %v364_v31 = vsel %vm360_vm3, %v362_v26, %v361_v25 }
  0x17   : > { %780 = vmatprep.mubr.msk.f32.mxu0 %vm201_vm2, %v199_v19 }
  0x18   : > { %781 = vmatmul.mubr.msk.f32.vlgmr.msra.gmra.mrb[0].mxu0 %vm201_vm2, %v200_v20 }
  0x19   : > { %850 = vmatpush3.bf16.msra.mxu0 %v847_v8  ;;  %791 = vmatprep.mubr.msk.f32.mxu0 %vm201_vm2, %v194_v14 }
  0x1a   : > { %852 = vmatprep.subr.bf16.mxu0 %v851_v21 }
  0x1d   : > { %854 = vmatpush3.bf16.msra.mxu0 %v851_v21 }
  0x1e   : > { %856 = vmatprep.subr.bf16.mxu0 %v855_v24 }
  0x20   : > { %792 = vmatmul.mubr.msk.f32.vlgmr.msra.gmra.mrb[0].mxu0 %vm201_vm2, %v192_v13 }
  0x21   : > { %858 = vmatpush3.bf16.msra.mxu0 %v855_v24  ;;  %802 = vmatprep.mubr.msk.f32.mxu0 %vm201_vm2, %v363_v30 }
  0x22   : > { %860 = vmatprep.subr.bf16.mxu0 %v859_v29 }
  0x25   : > { %862 = vmatpush3.bf16.msra.mxu0 %v859_v29 }
  0x28   : > { %803 = vmatmul.mubr.msk.f32.vlgmr.msra.gmra.mrb[0].mxu0 %vm201_vm2, %v364_v31 }
  0xfb   : > { %v804_v41 = vpop.f32.mrb[0].mxu0 }
  0xfc   : > { %v451_v42 = vadd.f32 %v804_v41, %v729_v40  ;;  %v435_v43 = vpop.f32.mrb[1].mxu0 }
  0xfd   : > { %v450_v44 = vadd.f32 %v729_v40, %v435_v43 }
  0xfe   : > { %v453_v45 = vmax.f32 %v451_v42, 0.0 }
  0xff   : > { %v452_v46 = vmax.f32 %v450_v44, 0.0 }
 0x100   : > { %v464_v47 = vrot.slane %v453_v45, 7 }
 0x101   : > { %v467_v48 = vrot.slane %v452_v46, 7 }
 0x103   : > { %v468_v51 = vsel %vm190_vm0, %v467_v48, %v464_v47  ;;  %v470_v52 = vsel %vm190_vm0, %v464_v47, %v467_v48 }
 0x104   : > { %v473_v53 = vrot.slane %v468_v51, 1  ;;  %v472_v54 = vrot.slane %v470_v52, 1 }
 0x106   : > { %v474_v58 = vsel %vm196_vm1, %v472_v54, %v473_v53  ;;  %v475_v59 = vsel %vm196_vm1, %v473_v53, %v472_v54 }
 0x107   : > { %814 = vmatmul.mubr.msk.f32.vlgmr.msra.gmra.mrb[0].mxu1 %vm201_vm2, %v474_v58 }
 0x108   : > { %871 = vmatpush3.bf16.msra.mxu1 %v870_v55  ;;  %816 = vmatprep.mubr.msk.f32.mxu1 %vm900_vm4, %v901_v39 }
 0x109   : > { %872 = vmatprep.subr.bf16.mxu1 %v899_v35 }
 0x10b   : > { %817 = vmatmul.mubr.msk.f32.gmra.mrb[2].mxu1 %vm201_vm2, %v475_v59 }
 0x10c   : > { %874 = vmatpush3.bf16.msra.mxu1 %v873_v60  ;;  %819 = vmatprep.mubr.msk.f32.mxu1 %vm900_vm4, %v901_v39 }
 0x10f   : > { %820 = vmatmul.mubr.msk.f32.gmra.mrb[4].mxu1 %vm201_vm2, %v472_v54 }
 0x110   : > { %830 = vmatprep.mubr.msk.f32.mxu1 %vm900_vm4, %v901_v39 }
 0x113   : > { %831 = vmatmul.mubr.msk.f32.vlgmr.msra.gmra.mrb[6].mxu1 %vm201_vm2, %v470_v52 }
 0x114   : > { %833 = vmatprep.mubr.msk.f32.mxu1 %vm900_vm4, %v901_v39 }
 0x117   : > { %834 = vmatmul.mubr.msk.f32.gmra.mrb[8].mxu1 %vm201_vm2, %v468_v51 }
 0x118   : > { %836 = vmatprep.mubr.msk.f32.mxu1 %vm900_vm4, %v901_v39 }
 0x11b   : > { %837 = vmatmul.mubr.msk.f32.gmra.mrb[10].mxu1 %vm201_vm2, %v470_v52 }
 0x1da   : > { %v548_v61 = vpop.f32.mrb[0].mxu1 }
 0x1db   : > { %v815_v62 = vpop.f32.mrb[1].mxu1 }
 0x1de   : > { %v553_v63 = vpop.f32.mrb[2].mxu1 }
 0x1df   : > { %v818_v0 = vpop.f32.mrb[3].mxu1 }
 0x1e2   : > { %v558_v1 = vpop.f32.mrb[4].mxu1 }
 0x1e3   : > { %v821_v2 = vpop.f32.mrb[5].mxu1 }
 0x1e6   : > { %v632_v4 = vpop.f32.mrb[6].mxu1 }
 0x1e7   : > { %v633_v5 = vadd.f32 %v632_v4, %v548_v61  ;;  %v832_v6 = vpop.f32.mrb[7].mxu1 }
 0x1e9   : > { %v650_v7 = vadd.f32 %v736_v3, %v633_v5 }
 0x1ea   : > { %v637_v8 = vpop.f32.mrb[8].mxu1 }
 0x1eb   : > { %v653_v9 = vmax.f32 %v650_v7, 0.0  ;;  %v638_v10 = vadd.f32 %v637_v8, %v553_v63  ;;  %v835_v11 = vpop.f32.mrb[9].mxu1 }
 0x1ed   : > { %656 = vst.msk [vmem:[%s170_s15] sm:$0xff] %vm201_vm2, %v653_v9  ;;  %v651_v12 = vadd.f32 %v736_v3, %v638_v10 }
 0x1ee   : > { %v642_v13 = vpop.f32.mrb[10].mxu1 }
 0x1ef   : > { %v654_v14 = vmax.f32 %v651_v12, 0.0  ;;  %v643_v15 = vadd.f32 %v642_v13, %v558_v1  ;;  %v838_v16 = vpop.f32.mrb[11].mxu1 }
 0x1f1   : > { %657 = vst.msk [vmem:[%s170_s15 + $0x8] sm:$0xff] %vm201_vm2, %v654_v14  ;;  %v652_v17 = vadd.f32 %v736_v3, %v643_v15 }
 0x1f3   : > { %v655_v18 = vmax.f32 %v652_v17, 0.0 }
 0x1f5   : > { %659 = vst.msk [vmem:[%s170_s15 + $0x10] sm:$0x1] %vm658_vm5, %v655_v18 }
 0x1f6 PF: > { %s13_s12 = sadd.s32 1, %s897_s12  }
 0x1f7   : > { %p10_p4 = scmp.ge.s32.totalorder %s13_s12, 4  }
 0x1f9   :  { %12 = sbr.rel (!%p10_p4) target bundleno = 1 (0x1), region = 62 }

</bundles_post_ra>
